<compile_context>
chip_gen: v5e
topology: v5e:2x2
jax: 0.10.0
libtpu: 0.0.40
codegen_flags: <defaults>
</compile_context>

<pallas_src>
import functools
import math

import jax
import jax.numpy as jnp
import numpy as np
from jax import lax
from jax.experimental import pallas as pl
from jax.experimental.pallas import tpu as pltpu

COV1_KER = 25            # cov1KerSize
COV2_KER = 50            # cov2KerSize
LEN_AFTER_AE = 500       # len_after_AE


def _round_up(n, m=128):
    return ((n + m - 1) // m) * m


OUT_PAD = _round_up(LEN_AFTER_AE)     # 500 -> 512 lane-dense output


def _gelu(x):
    # gelu(x) = x * 0.5 * (1 + erf(x / sqrt(2)))  -- exact, matches reference.
    return x * 0.5 * (1.0 + lax.erf(x / math.sqrt(2.0)))


# --------------------------------- kernel ------------------------------------
def _cov_kernel(xin_ref, t2_ref, t1_ref, pool_ref, b2_ref, b1_ref, o_ref):
    """Conv2d(1,1,(2,50)) + gelu + Conv1d(1,1,25) + gelu + AdaptiveAvgPool1d(500).

    All three stages are matmuls against precomputed, lane-padded band /
    pooling matrices, so the MXU does the work; biases are SMEM scalars.
    """
    # (B, 2*vs) @ (2*vs, L2P): both Conv2d rows fused into one band matrix.
    h = (jnp.dot(xin_ref[...], t2_ref[...], preferred_element_type=jnp.float32)
         + b2_ref[0, 0])
    h = _gelu(h)
    # (B, L2P) @ (L2P, L1P): Conv1d as band matrix (padded rows are zero).
    h = jnp.dot(h, t1_ref[...], preferred_element_type=jnp.float32) + b1_ref[0, 0]
    h = _gelu(h)
    # (B, L1P) @ (L1P, 512): adaptive avg pool; lane-dense, unmasked stores.
    o_ref[...] = jnp.dot(h, pool_ref[...], preferred_element_type=jnp.float32)


# ------------------------------ wrapper helpers -------------------------------
def _vmem():
    return pl.BlockSpec(memory_space=pltpu.MemorySpace.VMEM)


def _smem():
    return pl.BlockSpec(memory_space=pltpu.MemorySpace.SMEM)


def _toeplitz(w, in_len, in_pad, out_len, out_pad):
    """Band matrix T with T[j + c, j] = w[c] for j < out_len, i < in_len, else 0,
    so (x @ T)[:, j] = sum_c x[:, j+c] * w[c]  (valid cross-correlation,
    identical to torch Conv1d / Conv2d).  Padded rows/cols are exactly zero."""
    k = w.shape[0]
    i = jnp.arange(in_pad)[:, None]
    j = jnp.arange(out_pad)[None, :]
    d = i - j
    mask = (d >= 0) & (d < k) & (i < in_len) & (j < out_len)
    return jnp.where(mask, w[jnp.clip(d, 0, k - 1)], 0.0).astype(jnp.float32)


def _adaptive_pool_matrix(in_len, in_pad, out_len, out_pad):
    """(in_pad, out_pad) matrix reproducing torch AdaptiveAvgPool1d(out_len);
    padded rows (in_len..in_pad) and columns (out_len..out_pad) are zero.
    Static -> baked as a jit constant."""
    p = np.zeros((in_pad, out_pad), np.float32)
    for i in range(out_len):
        s = (i * in_len) // out_len
        e = -((-(i + 1) * in_len) // out_len)       # ceil((i+1)*L/out)
        p[s:e, i] = 1.0 / (e - s)
    return p


def cov_forward(x, params, *, vector_size):
    """Pallas implementation of cov.forward (vector_size // 2 must be >= 74)."""
    b = x.shape[0]
    vs = vector_size // 2
    l2 = vs - COV2_KER + 1        # Conv2d output length
    l1 = l2 - COV1_KER + 1        # Conv1d output length
    l2p = _round_up(l2)           # lane-padded intermediate widths
    l1p = _round_up(l1)

    # torch: X = cat((X[:, :vs], X[:, vs:]), 0).view(-1, 1, 2, vs)
    # -> image i = (cat_row[2i], cat_row[2i+1]).  Pure data movement, kept in
    #    XLA so the kernel never touches non-128-aligned slices.  Reshaping the
    #    (2b, vs) cat to (b, 2*vs) lays row-pair i out as [top_i | bot_i].
    xcat = jnp.concatenate([x[:, :vs], x[:, vs:]], axis=0)        # (2b, vs)
    xin = xcat.reshape(b, 2 * vs)                                 # (b, 2*vs)

    # Conv2d as ONE stacked Toeplitz band matrix (top rows then bottom rows).
    w2 = params["co2_w"]                                          # (2, COV2_KER)
    t2 = jnp.concatenate(
        [_toeplitz(w2[0], vs, vs, l2, l2p),
         _toeplitz(w2[1], vs, vs, l2, l2p)], axis=0)              # (2*vs, l2p)
    # Conv1d as band matrix; rows beyond l2 are zero (kill gelu(b2) padding).
    t1 = _toeplitz(params["co1_w"], l2, l2p, l1, l1p)             # (l2p, l1p)
    # Adaptive avg pool; rows beyond l1 are zero (kill gelu(b1) padding).
    pool = jnp.asarray(_adaptive_pool_matrix(l1, l1p, LEN_AFTER_AE, OUT_PAD))

    b2 = params["co2_b"].reshape(1, 1).astype(jnp.float32)
    b1 = params["co1_b"].reshape(1, 1).astype(jnp.float32)

    out_pad = pl.pallas_call(
        _cov_kernel,
        out_shape=jax.ShapeDtypeStruct((b, OUT_PAD), jnp.float32),
        in_specs=[_vmem(), _vmem(), _vmem(), _vmem(), _smem(), _smem()],
        out_specs=_vmem(),
    )(xin, t2, t1, pool, b2, b1)

    return out_pad[:, :LEN_AFTER_AE]


# ------------------------------ pure-JAX reference -----------------------------
def cov_reference(x, params, *, vector_size):
    vs = vector_size // 2
    xc = jnp.concatenate([x[:, :vs], x[:, vs:]], axis=0)          # (2b, vs)
    img = xc.reshape(-1, 1, 2, vs)                                # (b, 1, 2, vs)

    w2 = params["co2_w"].reshape(1, 1, 2, COV2_KER)
    y = lax.conv_general_dilated(img, w2, (1, 1), "VALID",
                                 dimension_numbers=("NCHW", "OIHW", "NCHW"),
                                 precision=lax.Precision.HIGHEST)
    y = _gelu(y + params["co2_b"])                                # (b, 1, 1, l2)

    l2 = vs - COV2_KER + 1
    y = y.reshape(-1, l2, 1)
    y = jnp.transpose(y, (0, 2, 1))                               # (b, 1, l2)
    y = y[:, :, None, :]                                          # (b, 1, 1, l2)
    w1 = params["co1_w"].reshape(1, 1, 1, COV1_KER)
    y = lax.conv_general_dilated(y, w1, (1, 1), "VALID",
                                 dimension_numbers=("NCHW", "OIHW", "NCHW"),
                                 precision=lax.Precision.HIGHEST)
    y = _gelu(y + params["co1_b"])                                # (b, 1, 1, l1)
    y = y[:, 0, 0, :]

    # AdaptiveAvgPool1d(LEN_AFTER_AE), transcribed directly from torch semantics.
    L = y.shape[-1]
    cols = []
    for i in range(LEN_AFTER_AE):
        s = (i * L) // LEN_AFTER_AE
        e = -((-(i + 1) * L) // LEN_AFTER_AE)
        cols.append(jnp.mean(y[:, s:e], axis=-1))
    return jnp.stack(cols, axis=-1).reshape(-1, LEN_AFTER_AE)


# ----------------------------------- main --------------------------------------
if __name__ == "__main__":
    VECTOR_SIZE = 256     # vs = 128 (lane-aligned split), l2 = 79, l1 = 55
    BATCH = 8

    key = jax.random.PRNGKey(0)
    kx, kw2, kb2, kw1, kb1 = jax.random.split(key, 5)
    x = jax.random.normal(kx, (BATCH, VECTOR_SIZE), jnp.float32)
    params = {
        "co2_w": 0.1 * jax.random.normal(kw2, (2, COV2_KER), jnp.float32),
        "co2_b": 0.1 * jax.random.normal(kb2, (), jnp.float32),
        "co1_w": 0.1 * jax.random.normal(kw1, (COV1_KER,), jnp.float32),
        "co1_b": 0.1 * jax.random.normal(kb1, (), jnp.float32),
    }

    fwd = jax.jit(functools.partial(cov_forward, vector_size=VECTOR_SIZE))
    out = fwd(x, params)
    jax.block_until_ready(out)

    ref = jax.jit(functools.partial(cov_reference, vector_size=VECTOR_SIZE))(x, params)
    assert out.shape == (BATCH, LEN_AFTER_AE)
    np.testing.assert_allclose(np.asarray(out), np.asarray(ref),
                               rtol=2e-2, atol=2e-2)
    print("KERNEL_OK")
</pallas_src>

<mosaic_0001>
module attributes {stable_mosaic.version = 11 : i64} {
  func.func @_cov_kernel(%arg0: memref<8x256xf32, #tpu.memory_space<vmem>>, %arg1: memref<256x128xf32, #tpu.memory_space<vmem>>, %arg2: memref<128x128xf32, #tpu.memory_space<vmem>>, %arg3: memref<128x512xf32, #tpu.memory_space<vmem>>, %arg4: memref<1x1xf32, #tpu.memory_space<smem>>, %arg5: memref<1x1xf32, #tpu.memory_space<smem>>, %arg6: memref<8x512xf32, #tpu.memory_space<vmem>>) attributes {dimension_semantics = [], scalar_prefetch = 0 : i64, scratch_operands = 0 : i64, tpu.core_type = #tpu.core_type<tc>} {
    %c0 = arith.constant 0 : index
    %c0_0 = arith.constant 0 : index
    %0 = vector.load %arg0[%c0, %c0_0] : memref<8x256xf32, #tpu.memory_space<vmem>>, vector<8x256xf32>
    %c0_1 = arith.constant 0 : index
    %c0_2 = arith.constant 0 : index
    %1 = vector.load %arg1[%c0_1, %c0_2] : memref<256x128xf32, #tpu.memory_space<vmem>>, vector<256x128xf32>
    %cst = arith.constant dense<0.000000e+00> : vector<8x128xf32>
    %2 = tpu.matmul %0, %1, %cst {dimension_numbers = #tpu.dot_dimension_numbers<[1], [0], [0], [1], [0, 0, 1, 1], [], []>} : vector<8x256xf32>, vector<256x128xf32>, vector<8x128xf32> -> vector<8x128xf32>
    %c0_3 = arith.constant 0 : index
    %c0_4 = arith.constant 0 : index
    %3 = memref.load %arg4[%c0_3, %c0_4] : memref<1x1xf32, #tpu.memory_space<smem>>
    %4 = vector.broadcast %3 : f32 to vector<8x128xf32>
    %5 = arith.addf %2, %4 : vector<8x128xf32>
    %cst_5 = arith.constant 5.000000e-01 : f32
    %6 = vector.broadcast %cst_5 : f32 to vector<8x128xf32>
    %7 = arith.mulf %5, %6 : vector<8x128xf32>
    %cst_6 = arith.constant 1.41421354 : f32
    %8 = vector.broadcast %cst_6 : f32 to vector<8x128xf32>
    %9 = arith.divf %5, %8 : vector<8x128xf32>
    %10 = math.erf %9 : vector<8x128xf32>
    %cst_7 = arith.constant 1.000000e+00 : f32
    %11 = vector.broadcast %cst_7 : f32 to vector<8x128xf32>
    %12 = arith.addf %11, %10 : vector<8x128xf32>
    %13 = arith.mulf %7, %12 : vector<8x128xf32>
    %c0_8 = arith.constant 0 : index
    %c0_9 = arith.constant 0 : index
    %14 = vector.load %arg2[%c0_8, %c0_9] : memref<128x128xf32, #tpu.memory_space<vmem>>, vector<128x128xf32>
    %cst_10 = arith.constant dense<0.000000e+00> : vector<8x128xf32>
    %15 = tpu.matmul %13, %14, %cst_10 {dimension_numbers = #tpu.dot_dimension_numbers<[1], [0], [0], [1], [0, 0, 1, 1], [], []>} : vector<8x128xf32>, vector<128x128xf32>, vector<8x128xf32> -> vector<8x128xf32>
    %c0_11 = arith.constant 0 : index
    %c0_12 = arith.constant 0 : index
    %16 = memref.load %arg5[%c0_11, %c0_12] : memref<1x1xf32, #tpu.memory_space<smem>>
    %17 = vector.broadcast %16 : f32 to vector<8x128xf32>
    %18 = arith.addf %15, %17 : vector<8x128xf32>
    %cst_13 = arith.constant 5.000000e-01 : f32
    %19 = vector.broadcast %cst_13 : f32 to vector<8x128xf32>
    %20 = arith.mulf %18, %19 : vector<8x128xf32>
    %cst_14 = arith.constant 1.41421354 : f32
    %21 = vector.broadcast %cst_14 : f32 to vector<8x128xf32>
    %22 = arith.divf %18, %21 : vector<8x128xf32>
    %23 = math.erf %22 : vector<8x128xf32>
    %cst_15 = arith.constant 1.000000e+00 : f32
    %24 = vector.broadcast %cst_15 : f32 to vector<8x128xf32>
    %25 = arith.addf %24, %23 : vector<8x128xf32>
    %26 = arith.mulf %20, %25 : vector<8x128xf32>
    %c0_16 = arith.constant 0 : index
    %c0_17 = arith.constant 0 : index
    %27 = vector.load %arg3[%c0_16, %c0_17] : memref<128x512xf32, #tpu.memory_space<vmem>>, vector<128x512xf32>
    %cst_18 = arith.constant dense<0.000000e+00> : vector<8x512xf32>
    %28 = tpu.matmul %26, %27, %cst_18 {dimension_numbers = #tpu.dot_dimension_numbers<[1], [0], [0], [1], [0, 0, 1, 1], [], []>} : vector<8x128xf32>, vector<128x512xf32>, vector<8x512xf32> -> vector<8x512xf32>
    %c0_19 = arith.constant 0 : index
    %c0_20 = arith.constant 0 : index
    %29 = vector.load %arg6[%c0_19, %c0_20] : memref<8x512xf32, #tpu.memory_space<vmem>>, vector<8x512xf32>
    tpu.vector_store %arg6[%c0_19, %c0_20], %28 {strides = array<i32>} : memref<8x512xf32, #tpu.memory_space<vmem>>, vector<8x512xf32>,
    return
  }
}

</mosaic_0001>

<bundles_post_ra>
// kernel: cov_forward.1
= control target key start
LH: loop header
LB: loop body
LE: loop exit
PB: predicated region body
PF: predicated region fallthrough
CT: control target
= control target key end

     0   :  { %s848_s0 = inlined_call_operand.vmem [shape: f32[8,256], index: 0, kind: input, shape index: {}]   ;;  %s849_s1 = inlined_call_operand.vmem [shape: f32[256,128], index: 1, kind: input, shape index: {}]   ;;  %s850_s2 = inlined_call_operand.vmem [shape: f32[128,128], index: 2, kind: input, shape index: {}]   ;;  %s851_s3 = inlined_call_operand.vmem [shape: f32[128,512], index: 3, kind: input, shape index: {}]   ;;  %s852_s4 = inlined_call_operand.<no memory space> [shape: f32[1,1], index: 4, kind: input, shape index: {}]   ;;  %s853_s5 = inlined_call_operand.<no memory space> [shape: f32[1,1], index: 5, kind: input, shape index: {}]   ;;  %s854_s6 = inlined_call_operand.hbm [shape: f32[8,512], index: 6, kind: output, shape index: {}]  }
   0x1   :  { %v43_v0 = vld [vmem:[%s849_s1 + $0x78] sm:$0xff]  ;;  %v42_v1 = vld [vmem:[%s849_s1 + $0x70] sm:$0xff]  ;;  %v41_v4 = vld [vmem:[%s849_s1 + $0x68] sm:$0xff] }
   0x2   :  { %v59_v2 = vld [vmem:[%s849_s1 + $0xf8] sm:$0xff]  ;;  %62 = vmatpush.msra.mxu0 %v43_v0  ;;  %v58_v3 = vld [vmem:[%s849_s1 + $0xf0] sm:$0xff]  ;;  %v57_v5 = vld [vmem:[%s849_s1 + $0xe8] sm:$0xff] }
   0x3   :  { %82 = vmatpush.msra.mxu1 %v59_v2  ;;  %v40_v6 = vld [vmem:[%s849_s1 + $0x60] sm:$0xff]  ;;  %v39_v8 = vld [vmem:[%s849_s1 + $0x58] sm:$0xff]  ;;  %v38_v10 = vld [vmem:[%s849_s1 + $0x50] sm:$0xff] }
   0x4   :  { %63 = vmatpush.msra.mxu0 %v42_v1  ;;  %v56_v7 = vld [vmem:[%s849_s1 + $0xe0] sm:$0xff]  ;;  %v55_v9 = vld [vmem:[%s849_s1 + $0xd8] sm:$0xff]  ;;  %v54_v11 = vld [vmem:[%s849_s1 + $0xd0] sm:$0xff] }
   0x5   :  { %83 = vmatpush.msra.mxu1 %v58_v3  ;;  %v37_v12 = vld [vmem:[%s849_s1 + $0x48] sm:$0xff] }
   0x6   :  { %64 = vmatpush.msra.mxu0 %v41_v4  ;;  %v53_v13 = vld [vmem:[%s849_s1 + $0xc8] sm:$0xff] }
   0x7   :  { %84 = vmatpush.msra.mxu1 %v57_v5 }
   0x8   :  { %65 = vmatpush.msra.mxu0 %v40_v6 }
   0x9   :  { %85 = vmatpush.msra.mxu1 %v56_v7 }
   0xa   :  { %66 = vmatpush.msra.mxu0 %v39_v8 }
   0xb   :  { %86 = vmatpush.msra.mxu1 %v55_v9 }
   0xc   :  { %67 = vmatpush.msra.mxu0 %v38_v10 }
   0xd   :  { %87 = vmatpush.msra.mxu1 %v54_v11 }
   0xe   :  { %13 = vsyncpa [#allocation5], 0  ;;  %v36_v14 = vld [vmem:[%s849_s1 + $0x40] sm:$0xff]  ;;  %68 = vmatpush.msra.mxu0 %v37_v12  ;;  %v35_v16 = vld [vmem:[%s849_s1 + $0x38] sm:$0xff]  ;;  %v435_v34 = vmov 1.4142135   ;;  %v61_v42 = vstv %s852_s4 }
   0xf   :  { %v52_v15 = vld [vmem:[%s849_s1 + $0xc0] sm:$0xff]  ;;  %88 = vmatpush.msra.mxu1 %v53_v13  ;;  %v51_v17 = vld [vmem:[%s849_s1 + $0xb8] sm:$0xff]  ;;  %v34_v18 = vld [vmem:[%s849_s1 + $0x30] sm:$0xff]  ;;  %403 = vrcp.f32 %v435_v34  ;;  %s390_s13 = sshll.u32 %s854_s6, 4  ;;  %s391_s13 = int_to_ptr.hbm [resolvable:$true] %s390_s13 }
  0x10   :  { %69 = vmatpush.msra.mxu0 %v36_v14  ;;  %v50_v19 = vld [vmem:[%s849_s1 + $0xb0] sm:$0xff]  ;;  %v33_v20 = vld [vmem:[%s849_s1 + $0x28] sm:$0xff]  ;;  %v32_v22 = vld [vmem:[%s849_s1 + $0x20] sm:$0xff] }
  0x11   :  { %89 = vmatpush.msra.mxu1 %v52_v15  ;;  %v49_v21 = vld [vmem:[%s849_s1 + $0xa8] sm:$0xff]  ;;  %v48_v23 = vld [vmem:[%s849_s1 + $0xa0] sm:$0xff]  ;;  %v31_v24 = vld [vmem:[%s849_s1 + $0x18] sm:$0xff] }
  0x12   :  { %70 = vmatpush.msra.mxu0 %v35_v16  ;;  %v47_v25 = vld [vmem:[%s849_s1 + $0x98] sm:$0xff]  ;;  %v30_v26 = vld [vmem:[%s849_s1 + $0x10] sm:$0xff]  ;;  %v29_v28 = vld [vmem:[%s849_s1 + $0x8] sm:$0xff] }
  0x13   :  { %90 = vmatpush.msra.mxu1 %v51_v17  ;;  %v46_v27 = vld [vmem:[%s849_s1 + $0x90] sm:$0xff]  ;;  %v45_v29 = vld [vmem:[%s849_s1 + $0x88] sm:$0xff]  ;;  %v28_v30 = vld [vmem:[%s849_s1] sm:$0xff] }
  0x14   :  { %71 = vmatpush.msra.mxu0 %v34_v18  ;;  %v44_v31 = vld [vmem:[%s849_s1 + $0x80] sm:$0xff]  ;;  %v27_v33 = vld [vmem:[%s848_s0 + $0x8] sm:$0xff]  ;;  %v168_v38 = vld [vmem:[%s850_s2 + $0x78] sm:$0xff] }
  0x15   :  { %91 = vmatpush.msra.mxu1 %v50_v19  ;;  %v26_v32 = vld [vmem:[%s848_s0] sm:$0xff]  ;;  %v404_v35 = vpop.eup %403  ;;  %171 = vmatpush.msra.mxu2 %v168_v38  ;;  %v167_v40 = vld [vmem:[%s850_s2 + $0x70] sm:$0xff]  ;;  %v166_v41 = vld [vmem:[%s850_s2 + $0x68] sm:$0xff] }
  0x16   :  { %72 = vmatpush.msra.mxu0 %v33_v20  ;;  %v104_v36 = vmul.f32 1.4142135, %v404_v35  ;;  %v165_v44 = vld [vmem:[%s850_s2 + $0x60] sm:$0xff]  ;;  %vm108_vm0 = vweird.f32 %v404_v35  ;;  %v164_v45 = vld [vmem:[%s850_s2 + $0x58] sm:$0xff]  ;;  %v163_v48 = vld [vmem:[%s850_s2 + $0x50] sm:$0xff] }
  0x17   :  { %92 = vmatpush.msra.mxu1 %v49_v21  ;;  %172 = vmatpush.msra.mxu2 %v167_v40  ;;  %v162_v51 = vld [vmem:[%s850_s2 + $0x48] sm:$0xff]  ;;  %v161_v53 = vld [vmem:[%s850_s2 + $0x40] sm:$0xff]  ;;  %v160_v55 = vld [vmem:[%s850_s2 + $0x38] sm:$0xff] }
  0x18   :  { %73 = vmatpush.msra.mxu0 %v32_v22  ;;  %v105_v37 = vsub.f32 1.0, %v104_v36  ;;  %v159_v57 = vld [vmem:[%s850_s2 + $0x30] sm:$0xff]  ;;  %v158_v59 = vld [vmem:[%s850_s2 + $0x28] sm:$0xff]  ;;  %v157_v62 = vld [vmem:[%s850_s2 + $0x20] sm:$0xff] }
  0x19   :  { %93 = vmatpush.msra.mxu1 %v48_v23  ;;  %173 = vmatpush.msra.mxu2 %v166_v41  ;;  %v156_v1 = vld [vmem:[%s850_s2 + $0x18] sm:$0xff]  ;;  %v155_v4 = vld [vmem:[%s850_s2 + $0x10] sm:$0xff]  ;;  %v154_v7 = vld [vmem:[%s850_s2 + $0x8] sm:$0xff] }
  0x1a   :  { %74 = vmatpush.msra.mxu0 %v31_v24  ;;  %v106_v39 = vmul.f32 %v404_v35, %v105_v37  ;;  %v153_v9 = vld [vmem:[%s850_s2] sm:$0xff]  ;;  %v296_v38 = vld [vmem:[%s851_s3 + $0x1e8] sm:$0xff]  ;;  %v298_v40 = vld [vmem:[%s851_s3 + $0x1f8] sm:$0xff] }
  0x1b   :  { %94 = vmatpush.msra.mxu1 %v47_v25  ;;  %174 = vmatpush.msra.mxu2 %v165_v44  ;;  %v295_v37 = vld [vmem:[%s851_s3 + $0x1e0] sm:$0xff]  ;;  %v294_v44 = vld [vmem:[%s851_s3 + $0x1d8] sm:$0xff] }
  0x1c   :  { %75 = vmatpush.msra.mxu0 %v30_v26  ;;  %v107_v43 = vadd.f32 %v404_v35, %v106_v39  ;;  %v297_v39 = vld [vmem:[%s851_s3 + $0x1f0] sm:$0xff]  ;;  %299 = vmatpush.msra.mxu3 %v295_v37  ;;  %v291_v41 = vld [vmem:[%s851_s3 + $0x1c0] sm:$0xff] }
  0x1d   :  { %95 = vmatpush.msra.mxu1 %v46_v27  ;;  %175 = vmatpush.msra.mxu2 %v164_v45  ;;  %v287_v45 = vld [vmem:[%s851_s3 + $0x1a0] sm:$0xff]  ;;  %v249_v37 = vld [vmem:[%s851_s3 + $0x70] sm:$0xff] }
  0x1e   :  { %76 = vmatpush.msra.mxu0 %v29_v28  ;;  %v595_v50 = vsel %vm108_vm0, %v404_v35, %v107_v43  ;;  %v293_v43 = vld [vmem:[%s851_s3 + $0x1d0] sm:$0xff]  ;;  %300 = vmatpush.msra.mxu3 %v291_v41  ;;  %v244_v41 = vld [vmem:[%s851_s3 + $0x48] sm:$0xff] }
  0x1f   :  { %96 = vmatpush.msra.mxu1 %v45_v29  ;;  %176 = vmatpush.msra.mxu2 %v163_v48  ;;  %v290_v48 = vld [vmem:[%s851_s3 + $0x1b8] sm:$0xff] }
  0x20   :  { %77 = vmatpush.msra.mxu0 %v28_v30  ;;  %301 = vmatpush.msra.mxu3 %v287_v45  ;;  %v239_v45 = vld [vmem:[%s851_s3 + $0x20] sm:$0xff] }
  0x21   :  { %97 = vmatpush.msra.mxu1 %v44_v31  ;;  %78 = vmatmul.f32.vlgmr.msra.gmra.mxu0 %v26_v32 }
  0x22   :  { %98 = vmatmul.f32.vlgmr.msra.gmra.mxu1 %v27_v33  ;;  %177 = vmatpush.msra.mxu2 %v162_v51  ;;  %v284_v51 = vld [vmem:[%s851_s3 + $0x188] sm:$0xff] }
  0x23   :  { %319 = vmatpush.msrb.mxu0 %v296_v38  ;;  %339 = vmatpush.msrb.mxu1 %v297_v39  ;;  %v250_v38 = vld [vmem:[%s851_s3 + $0x78] sm:$0xff] }
  0x24   :  { %178 = vmatpush.msra.mxu2 %v161_v53  ;;  %v170_v53 = vstv %s853_s5 }
  0x25   :  { %340 = vmatpush.msrb.mxu1 %v293_v43  ;;  %v246_v43 = vld [vmem:[%s851_s3 + $0x58] sm:$0xff] }
  0x26   :  { %179 = vmatpush.msra.mxu2 %v160_v55  ;;  %v279_v55 = vld [vmem:[%s851_s3 + $0x160] sm:$0xff] }
  0x28   :  { %180 = vmatpush.msra.mxu2 %v159_v57  ;;  %v281_v57 = vld [vmem:[%s851_s3 + $0x170] sm:$0xff] }
  0x2a   :  { %181 = vmatpush.msra.mxu2 %v158_v59  ;;  %v282_v59 = vld [vmem:[%s851_s3 + $0x178] sm:$0xff] }
  0x2c   :  { %182 = vmatpush.msra.mxu2 %v157_v62  ;;  %v276_v62 = vld [vmem:[%s851_s3 + $0x148] sm:$0xff] }
  0x2e   :  { %183 = vmatpush.msra.mxu2 %v156_v1 }
  0x30   :  { %184 = vmatpush.msra.mxu2 %v155_v4  ;;  %v273_v4 = vld [vmem:[%s851_s3 + $0x130] sm:$0xff] }
  0x32   :  { %185 = vmatpush.msra.mxu2 %v154_v7  ;;  %v268_v7 = vld [vmem:[%s851_s3 + $0x108] sm:$0xff] }
  0x34   :  { %186 = vmatpush.msra.mxu2 %v153_v9  ;;  %v270_v9 = vld [vmem:[%s851_s3 + $0x118] sm:$0xff] }
  0x36   :  { %359 = vmatpush.msrb.mxu2 %v298_v40  ;;  %v243_v40 = vld [vmem:[%s851_s3 + $0x40] sm:$0xff] }
  0x38   :  { %360 = vmatpush.msrb.mxu2 %v294_v44 }
  0x3a   :  { %361 = vmatpush.msrb.mxu2 %v290_v48  ;;  %v241_v48 = vld [vmem:[%s851_s3 + $0x30] sm:$0xff] }
  0x9e   :  { %v79_v46 = vpop.f32.mrf.mxu0 }
  0x9f   :  { %v99_v47 = vpop.f32.mrf.mxu1  ;;  %v80_v49 = vadd.f32 %v79_v46, %v61_v42  ;;  %v292_v42 = vld [vmem:[%s851_s3 + $0x1c8] sm:$0xff] }
  0xa0   :  { %320 = vmatpush.msrb.mxu0 %v292_v42  ;;  %v288_v46 = vld [vmem:[%s851_s3 + $0x1a8] sm:$0xff]  ;;  %v245_v42 = vld [vmem:[%s851_s3 + $0x50] sm:$0xff] }
  0xa1   :  { %v100_v52 = vadd.f32 %v99_v47, %v80_v49  ;;  %v289_v47 = vld [vmem:[%s851_s3 + $0x1b0] sm:$0xff]  ;;  %v283_v49 = vld [vmem:[%s851_s3 + $0x180] sm:$0xff] }
  0xa2   :  { %321 = vmatpush.msrb.mxu0 %v288_v46  ;;  %341 = vmatpush.msrb.mxu1 %v289_v47  ;;  %v240_v46 = vld [vmem:[%s851_s3 + $0x28] sm:$0xff] }
  0xa3   :  { %v110_v54 = vmul.f32 %v595_v50, %v100_v52  ;;  %v102_v34 = vmul.f32 0.5, %v100_v52  ;;  %v285_v52 = vld [vmem:[%s851_s3 + $0x190] sm:$0xff]  ;;  %302 = vmatpush.msra.mxu3 %v283_v49  ;;  %v242_v49 = vld [vmem:[%s851_s3 + $0x38] sm:$0xff] }
  0xa4   :  { %322 = vmatpush.msrb.mxu0 %v284_v51  ;;  %342 = vmatpush.msrb.mxu1 %v285_v52  ;;  %v235_v51 = vld [vmem:[%s851_s3] sm:$0xff] }
  0xa5   :  { %v111_v56 = vmul.f32 %v110_v54, %v110_v54  ;;  %303 = vmatpush.msra.mxu3 %v279_v55  ;;  %v238_v55 = vld [vmem:[%s851_s3 + $0x18] sm:$0xff] }
  0xa6   :  { %343 = vmatpush.msrb.mxu1 %v281_v57 }
  0xa7   :  { %v112_v58 = vmin.f32 %v111_v56, 16.0  ;;  %v280_v56 = vld [vmem:[%s851_s3 + $0x168] sm:$0xff] }
  0xa8   :  { %323 = vmatpush.msrb.mxu0 %v280_v56 }
  0xa9   :  { %v113_v60 = vmul.f32 2.1237322e-06, %v112_v58  ;;  %v124_v61 = vmul.f32 3.8918573e-05, %v112_v58 }
  0xaa   :  { %324 = vmatpush.msrb.mxu0 %v276_v62 }
  0xab   :  { %v114_v63 = vadd.f32 0.00028619796, %v113_v60  ;;  %v125_v0 = vadd.f32 0.001143296, %v124_v61  ;;  %v275_v61 = vld [vmem:[%s851_s3 + $0x140] sm:$0xff] }
  0xac   :  { %304 = vmatpush.msra.mxu3 %v275_v61 }
  0xad   :  { %v115_v2 = vmul.f32 %v114_v63, %v112_v58  ;;  %v126_v3 = vmul.f32 %v125_v0, %v112_v58  ;;  %v277_v63 = vld [vmem:[%s851_s3 + $0x150] sm:$0xff]  ;;  %v278_v0 = vld [vmem:[%s851_s3 + $0x158] sm:$0xff] }
  0xae   :  { %344 = vmatpush.msrb.mxu1 %v277_v63 }
  0xaf   :  { %v127_v5 = vadd.f32 0.014752088, %v126_v3  ;;  %v116_v6 = vadd.f32 0.0036580483, %v115_v2  ;;  %v271_v2 = vld [vmem:[%s851_s3 + $0x120] sm:$0xff]  ;;  %v272_v3 = vld [vmem:[%s851_s3 + $0x128] sm:$0xff] }
  0xb0   :  { %305 = vmatpush.msra.mxu3 %v271_v2  ;;  %325 = vmatpush.msrb.mxu0 %v272_v3 }
  0xb1   :  { %v128_v8 = vmul.f32 %v127_v5, %v112_v58  ;;  %v117_v11 = vmul.f32 %v116_v6, %v112_v58  ;;  %345 = vmatpush.msrb.mxu1 %v273_v4  ;;  %v267_v6 = vld [vmem:[%s851_s3 + $0x100] sm:$0xff] }
  0xb2   :  { %306 = vmatpush.msra.mxu3 %v267_v6  ;;  %326 = vmatpush.msrb.mxu0 %v268_v7 }
  0xb3   :  { %v129_v10 = vadd.f32 0.112945676, %v128_v8  ;;  %v118_v14 = vadd.f32 0.05243302, %v117_v11  ;;  %v269_v8 = vld [vmem:[%s851_s3 + $0x110] sm:$0xff]  ;;  %v263_v11 = vld [vmem:[%s851_s3 + $0xe0] sm:$0xff] }
  0xb4   :  { %346 = vmatpush.msrb.mxu1 %v269_v8  ;;  %307 = vmatpush.msra.mxu3 %v263_v11 }
  0xb5   :  { %v130_v12 = vmul.f32 %v129_v10, %v112_v58  ;;  %v119_v17 = vmul.f32 %v118_v14, %v112_v58  ;;  %v266_v14 = vld [vmem:[%s851_s3 + $0xf8] sm:$0xff] }
  0xb7   :  { %v131_v13 = vadd.f32 0.4994258, %v130_v12  ;;  %v120_v18 = vadd.f32 0.18741608, %v119_v17  ;;  %v264_v12 = vld [vmem:[%s851_s3 + $0xe8] sm:$0xff]  ;;  %v259_v17 = vld [vmem:[%s851_s3 + $0xc0] sm:$0xff] }
  0xb8   :  { %327 = vmatpush.msrb.mxu0 %v264_v12  ;;  %308 = vmatpush.msra.mxu3 %v259_v17 }
  0xb9   :  { %v132_v15 = vmul.f32 %v131_v13, %v112_v58  ;;  %v121_v20 = vmul.f32 %v120_v18, %v112_v58  ;;  %v265_v13 = vld [vmem:[%s851_s3 + $0xf0] sm:$0xff]  ;;  %v260_v18 = vld [vmem:[%s851_s3 + $0xc8] sm:$0xff] }
  0xba   :  { %347 = vmatpush.msrb.mxu1 %v265_v13  ;;  %328 = vmatpush.msrb.mxu0 %v260_v18 }
  0xbb   :  { %v133_v16 = vadd.f32 1.0, %v132_v15  ;;  %v122_v24 = vadd.f32 1.1283791, %v121_v20  ;;  %v262_v20 = vld [vmem:[%s851_s3 + $0xd8] sm:$0xff] }
  0xbd   :  { %405 = vrcp.f32 %v133_v16  ;;  %v145_v23 = vand.u32 2147483648, %v133_v16  ;;  %v143_v26 = vand.u32 2147483647, %v133_v16  ;;  %vm139_vm2 = vweird.f32 %v133_v16 }
  0xbe   :  { %v123_v29 = vmul.f32 %v122_v24, %v110_v54  ;;  %v286_v54 = vld [vmem:[%s851_s3 + $0x198] sm:$0xff]  ;;  %v256_v24 = vld [vmem:[%s851_s3 + $0xa8] sm:$0xff] }
  0xbf   :  { %v146_v28 = vor.u32 1.1754944e-38, %v145_v23  ;;  %vm144_vm4 = vcmp.eq.f32.partialorder %v143_v26, 8.507059e+37  ;;  %362 = vmatpush.msrb.mxu2 %v286_v54  ;;  %v255_v23 = vld [vmem:[%s851_s3 + $0xa0] sm:$0xff]  ;;  %329 = vmatpush.msrb.mxu0 %v256_v24  ;;  %v258_v26 = vld [vmem:[%s851_s3 + $0xb8] sm:$0xff]  ;;  %v237_v54 = vld [vmem:[%s851_s3 + $0x10] sm:$0xff] }
  0xc0   :  { %309 = vmatpush.msra.mxu3 %v255_v23 }
  0xc1   :  { %363 = vmatpush.msrb.mxu2 %v282_v59 }
  0xc3   :  { %v406_v19 = vpop.eup %405  ;;  %364 = vmatpush.msrb.mxu2 %v278_v0 }
  0xc4   :  { %v135_v21 = vmul.f32 %v406_v19, %v133_v16  ;;  %vm140_vm1 = vweird.f32 %v406_v19 }
  0xc5   :  { %vm141_vm3 = vmor %vm139_vm2, %vm140_vm1 }
  0xc6   :  { %v136_v22 = vsub.f32 1.0, %v135_v21 }
  0xc8   :  { %v137_v25 = vmul.f32 %v406_v19, %v136_v22 }
  0xca   :  { %v138_v27 = vadd.f32 %v406_v19, %v137_v25  ;;  %v257_v25 = vld [vmem:[%s851_s3 + $0xb0] sm:$0xff] }
  0xcc   :  { %v142_v30 = vsel %vm141_vm3, %v406_v19, %v138_v27  ;;  %v261_v19 = vld [vmem:[%s851_s3 + $0xd0] sm:$0xff] }
  0xcd   :  { %v147_v31 = vsel %vm144_vm4, %v146_v28, %v142_v30  ;;  %348 = vmatpush.msrb.mxu1 %v261_v19  ;;  %v252_v30 = vld [vmem:[%s851_s3 + $0x88] sm:$0xff] }
  0xce   :  { %v148_v32 = vmul.f32 %v147_v31, %v123_v29  ;;  %v251_v29 = vld [vmem:[%s851_s3 + $0x80] sm:$0xff]  ;;  %v253_v31 = vld [vmem:[%s851_s3 + $0x90] sm:$0xff]  ;;  %330 = vmatpush.msrb.mxu0 %v252_v30 }
  0xcf   :  { %349 = vmatpush.msrb.mxu1 %v257_v25  ;;  %310 = vmatpush.msra.mxu3 %v251_v29 }
  0xd0   :  { %v399_v33 = vclamps-f32 %v148_v32, 1.0  ;;  %v254_v32 = vld [vmem:[%s851_s3 + $0x98] sm:$0xff] }
  0xd1   :  { %350 = vmatpush.msrb.mxu1 %v253_v31 }
  0xd2   :  { %v151_v35 = vadd.f32 1.0, %v399_v33 }
  0xd3   :  { %351 = vmatpush.msrb.mxu1 %v249_v37 }
  0xd4   :  { %v152_v36 = vmul.f32 %v151_v35, %v102_v34  ;;  %v247_v34 = vld [vmem:[%s851_s3 + $0x60] sm:$0xff]  ;;  %v248_v35 = vld [vmem:[%s851_s3 + $0x68] sm:$0xff] }
  0xd5   :  { %311 = vmatpush.msra.mxu3 %v247_v34  ;;  %331 = vmatpush.msrb.mxu0 %v248_v35 }
  0xd6   :  { %187 = vmatmul.f32.vlgmr.msra.gmra.mxu2 %v152_v36  ;;  %352 = vmatpush.msrb.mxu1 %v245_v42 }
  0xd7   :  { %312 = vmatpush.msra.mxu3 %v243_v40  ;;  %332 = vmatpush.msrb.mxu0 %v244_v41 }
  0xd8   :  { %353 = vmatpush.msrb.mxu1 %v241_v48 }
  0xd9   :  { %313 = vmatpush.msra.mxu3 %v239_v45  ;;  %333 = vmatpush.msrb.mxu0 %v240_v46 }
  0xda   :  { %354 = vmatpush.msrb.mxu1 %v237_v54 }
  0xdb   :  { %314 = vmatpush.msra.mxu3 %v235_v51 }
 0x159   :  { %v188_v58 = vpop.f32.mrf.mxu2 }
 0x15a   :  { %v691_v60 = vadd.f32 %v188_v58, %v170_v53  ;;  %v236_v53 = vld [vmem:[%s851_s3 + $0x8] sm:$0xff] }
 0x15b   :  { %334 = vmatpush.msrb.mxu0 %v236_v53 }
 0x15c   :  { %v707_v1 = vmul.f32 %v691_v60, %v595_v50  ;;  %v274_v50 = vld [vmem:[%s851_s3 + $0x138] sm:$0xff]  ;;  %s436_s3 = smov [#allocation4]  }
 0x15d   :  { %365 = vmatpush.msrb.mxu2 %v274_v50  ;;  %s388_s10 = sshll.u32 %s436_s3, 4  ;;  %s389_s10 = int_to_ptr.vmem [resolvable:$true] %s388_s10 }
 0x15e   :  { %v193_v5 = vmul.f32 %v707_v1, %v707_v1 }
 0x15f   :  { %366 = vmatpush.msrb.mxu2 %v270_v9 }
 0x160   :  { %v735_v10 = vmin.f32 %v193_v5, 16.0 }
 0x161   :  { %367 = vmatpush.msrb.mxu2 %v266_v14 }
 0x162   :  { %v195_v15 = vmul.f32 2.1237322e-06, %v735_v10  ;;  %v206_v16 = vmul.f32 3.8918573e-05, %v735_v10 }
 0x163   :  { %368 = vmatpush.msrb.mxu2 %v262_v20 }
 0x164   :  { %v196_v21 = vadd.f32 0.00028619796, %v195_v15  ;;  %v207_v22 = vadd.f32 0.001143296, %v206_v16 }
 0x165   :  { %369 = vmatpush.msrb.mxu2 %v258_v26 }
 0x166   :  { %v197_v27 = vmul.f32 %v196_v21, %v735_v10  ;;  %v208_v28 = vmul.f32 %v207_v22, %v735_v10 }
 0x167   :  { %370 = vmatpush.msrb.mxu2 %v254_v32 }
 0x168   :  { %v209_v33 = vadd.f32 0.014752088, %v208_v28  ;;  %v198_v36 = vadd.f32 0.0036580483, %v197_v27 }
 0x169   :  { %371 = vmatpush.msrb.mxu2 %v250_v38 }
 0x16a   :  { %v210_v39 = vmul.f32 %v209_v33, %v735_v10  ;;  %v199_v47 = vmul.f32 %v198_v36, %v735_v10 }
 0x16b   :  { %372 = vmatpush.msrb.mxu2 %v246_v43 }
 0x16c   :  { %v211_v44 = vadd.f32 0.112945676, %v210_v39  ;;  %v200_v57 = vadd.f32 0.05243302, %v199_v47 }
 0x16d   :  { %373 = vmatpush.msrb.mxu2 %v242_v49 }
 0x16e   :  { %v212_v52 = vmul.f32 %v211_v44, %v735_v10  ;;  %v201_v61 = vmul.f32 %v200_v57, %v735_v10 }
 0x16f   :  { %374 = vmatpush.msrb.mxu2 %v238_v55 }
 0x170   :  { %v213_v56 = vadd.f32 0.4994258, %v212_v52  ;;  %v202_v62 = vadd.f32 0.18741608, %v201_v61 }
 0x172   :  { %v214_v58 = vmul.f32 %v213_v56, %v735_v10  ;;  %v203_v0 = vmul.f32 %v202_v62, %v735_v10  ;;  %v191_v10 = vmul.f32 0.5, %v691_v60 }
 0x174   :  { %v215_v59 = vadd.f32 1.0, %v214_v58  ;;  %v204_v50 = vadd.f32 1.1283791, %v203_v0 }
 0x176   :  { %407 = vrcp.f32 %v215_v59  ;;  %v227_v4 = vand.u32 2147483648, %v215_v59  ;;  %v225_v6 = vand.u32 2147483647, %v215_v59  ;;  %vm221_vm6 = vweird.f32 %v215_v59 }
 0x177   :  { %v205_v9 = vmul.f32 %v204_v50, %v707_v1 }
 0x178   :  { %v228_v8 = vor.u32 1.1754944e-38, %v227_v4  ;;  %vm226_vm8 = vcmp.eq.f32.partialorder %v225_v6, 8.507059e+37 }
 0x17c   :  { %v408_v63 = vpop.eup %407 }
 0x17d   :  { %v217_v2 = vmul.f32 %v408_v63, %v215_v59  ;;  %vm222_vm5 = vweird.f32 %v408_v63 }
 0x17e   :  { %vm223_vm7 = vmor %vm221_vm6, %vm222_vm5 }
 0x17f   :  { %v218_v3 = vsub.f32 1.0, %v217_v2 }
 0x181   :  { %v219_v5 = vmul.f32 %v408_v63, %v218_v3 }
 0x183   :  { %v220_v7 = vadd.f32 %v408_v63, %v219_v5 }
 0x185   :  { %v224_v11 = vsel %vm223_vm7, %v408_v63, %v220_v7 }
 0x186   :  { %v229_v12 = vsel %vm226_vm8, %v228_v8, %v224_v11 }
 0x187   :  { %v230_v13 = vmul.f32 %v229_v12, %v205_v9 }
 0x189   :  { %v400_v14 = vclamps-f32 %v230_v13, 1.0 }
 0x18b   :  { %v233_v15 = vadd.f32 1.0, %v400_v14 }
 0x18d   :  { %v234_v16 = vmul.f32 %v233_v15, %v191_v10 }
 0x18f   :  { %315 = vmatmul.f32.vlgmr.msra.gmra.mxu3 %v234_v16  ;;  %335 = vmatmul.f32.vlgmr.msrb.gmra.mxu0 %v234_v16 }
 0x190   :  { %355 = vmatmul.f32.vlgmr.msrb.gmra.mxu1 %v234_v16  ;;  %375 = vmatmul.f32.vlgmr.msrb.gmra.mxu2 %v234_v16 }
 0x20c   :  { %v336_v17 = vpop.f32.mrf.mxu0 }
 0x20d   :  { %380 = vst [vmem:[#allocation4 + $0x8] sm:$0xff] %v336_v17  ;;  %v356_v18 = vpop.f32.mrf.mxu1 }
 0x20e   :  { %381 = vst [vmem:[#allocation4 + $0x10] sm:$0xff] %v356_v18 }
 0x212   :  { %v316_v1 = vpop.f32.mrf.mxu3 }
 0x213   :  { %379 = vst [vmem:[#allocation4] sm:$0xff] %v316_v1  ;;  %v376_v60 = vpop.f32.mrf.mxu2 }
 0x214   :  { %382 = vst [vmem:[#allocation4 + $0x18] sm:$0xff] %v376_v60 }
 0x215   :  { %393 = dma.vmem_to_hbm [thread:$0]  %s389_s10, 512, %s391_s13, [#allocation5]  }
 0x216   :  { %433 = dma.done.wait [#allocation5], 512  }
 0x217   :  { %434 = vsyncadd [#allocation5], 4294966784 }
 0x218   :  { %398 = vsyncpa [#allocation5], 1 }

</bundles_post_ra>
